<compile_context>
chip_gen: v7x
topology: tpu7x:2x2x1
jax: 0.10.0
libtpu: 0.0.40
codegen_flags: <defaults>
</compile_context>

<pallas_src>
import functools

import jax
import jax.numpy as jnp
from jax import lax
from jax.experimental import pallas as pl
from jax.experimental.pallas import tpu as pltpu

LANES = 128
_NUM_SPLITS = 2   # leading "parallel" axis for pass-1 partial sums (2 TCs on v7x;
                  # degenerates to a 2-long serial loop on 1-TC chips)


def _round_up(x, m):
    return ((x + m - 1) // m) * m


def _tpu_generation():
    try:
        kind = jax.devices()[0].device_kind.lower()
    except Exception:
        kind = ""
    for g in (7, 6, 5, 4, 3, 2):
        if "v%d" % g in kind:
            return g
    return 0


@functools.lru_cache(maxsize=None)
def _device_params():
    """(row_tile, fused_input_limit_bytes, fused_vmem_limit_bytes) per TPU generation."""
    gen = _tpu_generation()
    if gen >= 6:
        # v6e/v7x: 32 MiB scoped-VMEM default.  4 MiB streaming blocks
        # (2x4 in + 2x4 out double-buffered = 16 MiB) and a 12 MiB fused path
        # with the scoped limit raised to 40 MiB (v7x physical is 64 MiB).
        return 8192, 12 * 1024 * 1024, 40 * 1024 * 1024
    # v5e (16 MiB scoped default) and older/unknown: 2 MiB blocks, 8 MiB fused
    # path (physical VMEM 128 MiB, so raising the scoped limit is safe).
    return 4096, 8 * 1024 * 1024, 32 * 1024 * 1024


# ----------------------------------------------------------------------------
# Standardlize:  y = x / mean(x)
# ----------------------------------------------------------------------------
def _standardlize_fused_kernel(n, x_ref, o_ref):
    """Whole array in one VMEM block: sum + scale in a single pass."""
    x = x_ref[...].astype(jnp.float32)
    inv_mean = jnp.float32(n) / jnp.sum(x)          # 1/mean == n/sum
    o_ref[...] = (x * inv_mean).astype(o_ref.dtype)


def _partial_sum_kernel(rows_valid, row_tile, x_ref, part_ref, acc_ref):
    """Pass 1 (tiled): per-split (8,128) partial sum with in-kernel tail masking."""
    i = pl.program_id(1)

    @pl.when(i == 0)
    def _():
        acc_ref[...] = jnp.zeros_like(acc_ref)

    block = pl.program_id(0) * pl.num_programs(1) + i     # logical (unclamped) block
    remaining = rows_valid - block * row_tile
    x = x_ref[...].astype(jnp.float32)
    row_id = lax.broadcasted_iota(jnp.int32, x.shape, 0)
    x = jnp.where(row_id < remaining, x, 0.0)              # mask tail / duplicate blocks
    # vreg-shaped accumulation: pure sublane-aligned VPU adds into an (8,128) scratch.
    acc_ref[...] += jnp.sum(x.reshape(row_tile // 8, 8, LANES), axis=0)

    @pl.when(i == pl.num_programs(1) - 1)
    def _():
        part_ref[...] = acc_ref[...]


def _scale_kernel(n, part_ref, x_ref, o_ref):
    """Pass 2 (tiled): multiply by 1/mean derived in-kernel from the resident partials."""
    inv_mean = jnp.float32(n) / jnp.sum(part_ref[...])     # tiny reduce, hidden under DMA
    o_ref[...] = (x_ref[...].astype(jnp.float32) * inv_mean).astype(o_ref.dtype)


def _standardlize_fused(x, vmem_limit):
    n = x.size
    orig_shape, orig_dtype = x.shape, x.dtype
    rows = pl.cdiv(n, LANES)
    padded_n = rows * LANES
    flat = x.reshape(-1)
    if padded_n != n:
        # TODO(synk): rare non-128-multiple inputs pay one small pad copy here.
        flat = jnp.pad(flat, (0, padded_n - n))
    x2d = flat.reshape(rows, LANES)                         # lane-dense single block
    y2d = pl.pallas_call(
        functools.partial(_standardlize_fused_kernel, float(n)),
        out_shape=jax.ShapeDtypeStruct((rows, LANES), orig_dtype),
        compiler_params=pltpu.CompilerParams(vmem_limit_bytes=vmem_limit),
    )(x2d)
    if padded_n != n:
        return y2d.reshape(-1)[:n].reshape(orig_shape)
    return y2d.reshape(orig_shape)


def _standardlize_tiled(x):
    row_tile, _, _ = _device_params()
    orig_shape, orig_dtype = x.shape, x.dtype
    n = x.size
    flat = x.reshape(-1)

    rows = pl.cdiv(n, LANES)
    padded_n = rows * LANES
    if padded_n != n:
        # TODO(synk): mask the last partial 128-lane row in-kernel instead of padding.
        flat = jnp.pad(flat, (0, padded_n - n))
    x2d = flat.reshape(rows, LANES)

    row_tile = min(row_tile, _round_up(rows, 8))
    blocks = pl.cdiv(rows, row_tile)
    inner = pl.cdiv(blocks, _NUM_SPLITS)

    def in_map(c, i):
        # Clamp so duplicate trailing blocks stay in bounds; the kernel masks them to 0.
        return (jnp.minimum(c * inner + i, blocks - 1), 0)

    # Pass 1: per-split (8,128) partial sums; tail rows masked in-kernel (no host pad).
    part = pl.pallas_call(
        functools.partial(_partial_sum_kernel, rows, row_tile),
        out_shape=jax.ShapeDtypeStruct((_NUM_SPLITS * 8, LANES), jnp.float32),
        grid_spec=pltpu.PrefetchScalarGridSpec(
            num_scalar_prefetch=0,
            grid=(_NUM_SPLITS, inner),
            in_specs=[pl.BlockSpec((row_tile, LANES), in_map)],
            out_specs=pl.BlockSpec((8, LANES), lambda c, i: (c, 0)),
            scratch_shapes=[pltpu.VMEM((8, LANES), jnp.float32)],
        ),
        compiler_params=pltpu.CompilerParams(
            dimension_semantics=("parallel", "arbitrary")),
    )(x2d)

    # Pass 2: streaming multiply; 1/mean is computed in-kernel from the resident
    # partials block (no scalar glue op between the two pallas_calls).  Edge-block
    # stores are clipped by Pallas, so no host-side slice is needed for the row tail.
    y2d = pl.pallas_call(
        functools.partial(_scale_kernel, float(n)),
        out_shape=jax.ShapeDtypeStruct((rows, LANES), orig_dtype),
        grid_spec=pltpu.PrefetchScalarGridSpec(
            num_scalar_prefetch=0,
            grid=(blocks,),
            in_specs=[
                pl.BlockSpec((_NUM_SPLITS * 8, LANES), lambda i: (0, 0)),
                pl.BlockSpec((row_tile, LANES), lambda i: (i, 0)),
            ],
            out_specs=pl.BlockSpec((row_tile, LANES), lambda i: (i, 0)),
        ),
        compiler_params=pltpu.CompilerParams(
            dimension_semantics=("parallel",)),
    )(part, x2d)

    if padded_n != n:
        return y2d.reshape(-1)[:n].reshape(orig_shape)
    return y2d.reshape(orig_shape)


def standardlize(x):
    """x / x.mean() over ALL elements (torch `Standardlize` semantics)."""
    _, fused_limit, fused_vmem = _device_params()
    if x.size * 4 <= fused_limit:
        return _standardlize_fused(x, fused_vmem)
    return _standardlize_tiled(x)


# ----------------------------------------------------------------------------
# Fused weight-map preamble:  standardlize(exp(-mean_c(weight_map)))
# ----------------------------------------------------------------------------
def _wm_fused_kernel(n_out, x_ref, o_ref):
    x = x_ref[...].astype(jnp.float32)                  # (B, C, H, W)
    m = jnp.mean(x, axis=1, keepdims=True)              # channel mean -> (B,1,H,W)
    e = jnp.exp(-m)
    inv_mean = jnp.float32(n_out) / jnp.sum(e)
    o_ref[...] = (e * inv_mean).astype(o_ref.dtype)


def weight_map_standardlized(weight_map):
    """standardlize(exp(-mean over channels)) -> (B,1,H,W); single fused pass if it fits."""
    B, C, H, W = weight_map.shape
    _, _, fused_vmem = _device_params()
    he, we = _round_up(H, 8), _round_up(W, LANES)
    in_eff = B * C * he * we * 4
    out_eff = B * he * we * 4
    if in_eff + 3 * out_eff + (2 << 20) <= fused_vmem:
        return pl.pallas_call(
            functools.partial(_wm_fused_kernel, float(B * H * W)),
            out_shape=jax.ShapeDtypeStruct((B, 1, H, W), weight_map.dtype),
            compiler_params=pltpu.CompilerParams(vmem_limit_bytes=fused_vmem),
        )(weight_map)
    # TODO(synk): for maps too large for one VMEM block, fuse mean/exp into the tiled
    #             standardlize pass 1 to avoid the extra HBM passes below.
    wm = jnp.mean(weight_map, axis=1, keepdims=True)
    return standardlize(jnp.exp(-wm))


# ----------------------------------------------------------------------------
# Normalize(power=2):  y = x / (||x||_2 along last dim + 1e-7)
# ----------------------------------------------------------------------------
def _l2norm_kernel(eps, x_ref, o_ref):
    x = x_ref[...].astype(jnp.float32)
    norm = jnp.sqrt(jnp.sum(x * x, axis=-1, keepdims=True))
    o_ref[...] = (x * (1.0 / (norm + eps))).astype(o_ref.dtype)


def l2_normalize(x, eps=1e-7):
    """x: (N, C); normalize each row by its L2 norm (+eps), like torch Normalize(2)."""
    N, C = x.shape
    kernel = functools.partial(_l2norm_kernel, float(eps))
    if N * C * 4 <= 4 * 1024 * 1024:            # sampled patches are tiny -> single block
        return pl.pallas_call(
            kernel, out_shape=jax.ShapeDtypeStruct((N, C), x.dtype)
        )(x)
    row_tile = 1024                              # tiled fallback for very large N
    n_pad = pl.cdiv(N, row_tile) * row_tile
    xp = jnp.pad(x, ((0, n_pad - N), (0, 0))) if n_pad != N else x
    y = pl.pallas_call(
        kernel,
        out_shape=jax.ShapeDtypeStruct((n_pad, C), x.dtype),
        grid_spec=pltpu.PrefetchScalarGridSpec(
            num_scalar_prefetch=0,
            grid=(n_pad // row_tile,),
            in_specs=[pl.BlockSpec((row_tile, C), lambda i: (i, 0))],
            out_specs=pl.BlockSpec((row_tile, C), lambda i: (i, 0)),
        ),
        compiler_params=pltpu.CompilerParams(dimension_semantics=("parallel",)),
    )(xp)
    return y[:N] if n_pad != N else y


# ----------------------------------------------------------------------------
# PatchSampleF forward (use_mlp=False path)
# ----------------------------------------------------------------------------
def _area_interpolate(wm, size):
    """F.interpolate(..., mode='area') for identity / integer downsample ratios."""
    B, C, h, w = wm.shape
    H, W = size
    if (h, w) == (H, W):
        return wm
    if h % H == 0 and w % W == 0:
        return wm.reshape(B, C, H, h // H, W, w // W).mean(axis=(3, 5))
    # TODO(synk): general non-integer-ratio 'area' interpolation not implemented.
    raise NotImplementedError("area interpolation needs integer downsample ratio")


def patch_sample_f_forward(feats, num_patches=64, patch_ids=None,
                           weight_map=None, key=None):
    """Mirrors PatchSampleF.forward with use_mlp=False.

    feats: list of (B, C, H, W) arrays.  Returns (feats, ids[, weight_samples]).
    """
    return_ids, return_feats, return_weights = [], [], []
    wm = None
    if weight_map is not None:
        wm = weight_map_standardlized(weight_map)            # fused Pallas kernel
    for feat_id, feat in enumerate(feats):
        B, C, H, W = feat.shape
        if num_patches > 0:
            if patch_ids is not None:
                patch_id = patch_ids[feat_id]
            else:
                k = jax.random.fold_in(key, feat_id)
                patch_id = jax.random.permutation(k, H * W)[: min(num_patches, H * W)]
            P = patch_id.shape[0]
            # Gather FIRST in the native NCHW layout (reads only the P sampled columns),
            # then transpose only the tiny (B, C, P) sample.  Avoids a full feature-map
            # HBM transpose pass per level.
            sample_ncp = jnp.take(feat.reshape(B, C, H * W), patch_id, axis=2)   # (B,C,P)
            x_sample = jnp.transpose(sample_ncp, (0, 2, 1)).reshape(B * P, C)
        else:
            # TODO(synk): num_patches == 0 (full-map) branch not implemented here.
            raise NotImplementedError("num_patches == 0 path not implemented")
        if wm is not None:
            wm_i = _area_interpolate(wm, (H, W))              # (B,1,H,W), C == 1
            w_sample = jnp.take(wm_i.reshape(B, H * W), patch_id, axis=1)
            return_weights.append(w_sample.reshape(B * P, 1))
        # TODO(synk): use_mlp=True path (lazily created Linear/ReLU MLP) not implemented.
        # TODO(synk): gather + l2_normalize could be fused into one Pallas kernel with a
        #             scalar-prefetched patch_id; left separate (sample is ~128 KiB).
        x_sample = l2_normalize(x_sample)                     # Pallas kernel
        return_ids.append(patch_id)
        return_feats.append(x_sample)
    if weight_map is not None:
        return return_feats, return_ids, return_weights
    return return_feats, return_ids


# ----------------------------------------------------------------------------
# Pure-JAX reference (mirrors the PyTorch math) for correctness checking
# ----------------------------------------------------------------------------
def _ref_forward(feats, num_patches, patch_ids, weight_map):
    out_feats, out_ids, out_w = [], [], []
    wm = None
    if weight_map is not None:
        wm = jnp.exp(-jnp.mean(weight_map, axis=1, keepdims=True))
        wm = wm / jnp.mean(wm)
    for fid, feat in enumerate(feats):
        B, C, H, W = feat.shape
        fr = jnp.transpose(feat, (0, 2, 3, 1)).reshape(B, H * W, C)
        pid = patch_ids[fid]
        xs = jnp.take(fr, pid, axis=1).reshape(B * pid.shape[0], C)
        if wm is not None:
            wr = jnp.transpose(wm, (0, 2, 3, 1)).reshape(B, H * W, 1)
            out_w.append(jnp.take(wr, pid, axis=1).reshape(B * pid.shape[0], 1))
        norm = jnp.sqrt(jnp.sum(xs * xs, axis=1, keepdims=True))
        out_feats.append(xs / (norm + 1e-7))
        out_ids.append(pid)
    return out_feats, out_ids, out_w


if __name__ == "__main__":
    key = jax.random.PRNGKey(0)
    kf, kw, kp, ks, kb = jax.random.split(key, 5)

    B, C, H, W = 2, 4, 16, 16
    num_patches = 64
    feat = jax.random.normal(kf, (B, C, H, W), dtype=jnp.float32)
    weight_map = jax.random.normal(kw, (B, C, H, W), dtype=jnp.float32)
    patch_id = jax.random.permutation(kp, H * W)[:num_patches]

    # 1) Standardlize — fused single-pass path (small input).
    xs = jax.random.normal(ks, (B, C, H, W), dtype=jnp.float32) + 1.5
    ys = jax.block_until_ready(standardlize(xs))
    ys_ref = xs / jnp.mean(xs)
    assert ys.shape == xs.shape and ys.dtype == xs.dtype
    assert jnp.allclose(ys, ys_ref, rtol=1e-5, atol=1e-5)

    # 2) Standardlize — tiled two-pass path, row count NOT a multiple of the row tile
    #    (exercises the in-kernel tail masking and the split partial sums).
    xb = jax.random.normal(kb, (2, 3, 700, 512), dtype=jnp.float32) + 1.5
    yb = jax.block_until_ready(_standardlize_tiled(xb))
    yb_ref = xb / jnp.mean(xb)
    assert yb.shape == xb.shape and yb.dtype == xb.dtype
    assert jnp.allclose(yb, yb_ref, rtol=1e-4, atol=1e-4)

    # 2b) Dispatcher on the same mid-size array (fused on v6e/v7x, tiled on v5e).
    yd = jax.block_until_ready(standardlize(xb))
    assert jnp.allclose(yd, yb_ref, rtol=1e-4, atol=1e-4)

    # 3) Full PatchSampleF forward (use_mlp=False) with a weight map.
    feats_out, ids_out, w_out = patch_sample_f_forward(
        [feat], num_patches=num_patches, patch_ids=[patch_id],
        weight_map=weight_map)
    feats_out = jax.block_until_ready(feats_out)
    ref_feats, ref_ids, ref_w = _ref_forward(
        [feat], num_patches, [patch_id], weight_map)
    assert feats_out[0].shape == (B * num_patches, C)
    assert jnp.allclose(feats_out[0], ref_feats[0], rtol=1e-5, atol=1e-5)
    assert jnp.allclose(w_out[0], ref_w[0], rtol=1e-5, atol=1e-5)
    assert jnp.array_equal(ids_out[0], ref_ids[0])

    print("KERNEL_OK")
</pallas_src>

<mosaic_0001>
module attributes {stable_mosaic.version = 11 : i64} {
  func.func @_standardlize_fused_kernel(%arg0: memref<16x128xf32, #tpu.memory_space<vmem>>, %arg1: memref<16x128xf32, #tpu.memory_space<vmem>>) attributes {dimension_semantics = [], scalar_prefetch = 0 : i64, scratch_operands = 0 : i64, tpu.core_type = #tpu.core_type<tc>} {
    %c0 = arith.constant 0 : index
    %c0_0 = arith.constant 0 : index
    %0 = vector.load %arg0[%c0, %c0_0] : memref<16x128xf32, #tpu.memory_space<vmem>>, vector<16x128xf32>
    %1 = vector.shape_cast %0 : vector<16x128xf32> to vector<1x16x128xf32>
    %cst = arith.constant dense<0.000000e+00> : vector<1xf32>
    %2 = vector.multi_reduction <add>, %1, %cst [1, 2] : vector<1x16x128xf32> to vector<1xf32>
    %3 = vector.shape_cast %2 : vector<1xf32> to vector<1x1x1xf32>
    %4 = vector.extract %3[0, 0, 0] : f32 from vector<1x1x1xf32>
    %cst_1 = arith.constant 2.048000e+03 : f32
    %5 = arith.divf %cst_1, %4 : f32
    %6 = vector.broadcast %5 : f32 to vector<16x128xf32>
    %7 = arith.mulf %0, %6 : vector<16x128xf32>
    %c0_2 = arith.constant 0 : index
    %c0_3 = arith.constant 0 : index
    %8 = vector.load %arg1[%c0_2, %c0_3] : memref<16x128xf32, #tpu.memory_space<vmem>>, vector<16x128xf32>
    tpu.vector_store %arg1[%c0_2, %c0_3], %7 {strides = array<i32>} : memref<16x128xf32, #tpu.memory_space<vmem>>, vector<16x128xf32>,
    return
  }
}

</mosaic_0001>

<bundles_post_ra>
// kernel: tpu_custom_call.1
= control target key start
LH: loop header
LB: loop body
LE: loop exit
PB: predicated region body
PF: predicated region fallthrough
CT: control target
= control target key end

     0   :  { %6 = vsyncpa [#allocation3], 0  ;;  %s163_s0 = inlined_call_operand.hbm [shape: f32[16,128], index: 0, kind: input, shape index: {}]   ;;  %s164_s1 = inlined_call_operand.hbm [shape: f32[16,128], index: 1, kind: output, shape index: {}]  }
   0x1   :  { %7 = vsyncpa [#allocation4], 0  ;;  %s119_s6 = smov [#allocation2]   ;;  %s71_s10 = scalar_lea.hbm %s163_s0, 256 }
   0x2   :  { %s13_s7 = sshll.u32 %s119_s6, 4  ;;  %p72_p0 = scmp.ne.s32.totalorder %s163_s0, %s71_s10  ;;  %s14_s7 = int_to_ptr.vmem [resolvable:$true] %s13_s7 }
   0x3   :  { %p75_p1 = scmp.lt.u32.totalorder %s71_s10, %s163_s0 }
   0x5   :  { %p77_p2 = pnand %p75_p1, %p72_p0 }
   0x7   :  { %80 = shalt.err (!%p77_p2)
}
   0x8   :  { %s81_s15 = scalar_lea.vmem %s14_s7, 256  ;;  %p86_p4 = scmp.lt.s32.totalorder %s14_s7, %s14_s7 }
   0x9   :  { %p82_p3 = scmp.ne.s32.totalorder %s14_s7, %s81_s15  ;;  %p87_p5 = scmp.lt.s32.totalorder %s81_s15, %s81_s15 }
   0xb   :  { %p88_p6 = por %p87_p5, %p86_p4 }
   0xd   :  { %p89_p7 = pnand %p88_p6, %p82_p3 }
   0xf   :  { %92 = shalt.err (!%p89_p7)
}
  0x10   :  { %s120_s16 = smov 128   ;;  %s121_s17 = smov 8  }
  0x11   :  { %19 = dma.hbm_to_vmem [thread:$0]  %s163_s0, 256, %s14_s7, [#allocation3], %s120_s16, %s120_s16, %s121_s17  }
  0x12   :  { %115 = dma.done.wait [#allocation3], 256  }
  0x13   :  { %116 = vsyncadd [#allocation3], 4294967040  ;;  %v23_v0 = vld [vmem:[#allocation2] sm:$0xff]  ;;  %v24_v1 = vld [vmem:[#allocation2 + $0x8] sm:$0xff]  ;;  %s122_s22 = smov [#allocation5]  }
  0x14   :  { %v25_v2 = vadd.f32 %v24_v1, %v23_v0  ;;  %s49_s23 = sshll.u32 %s122_s22, 4  ;;  %s50_s23 = int_to_ptr.vmem [resolvable:$true] %s49_s23 }
  0x15   :  { %s93_s24 = scalar_lea.vmem %s50_s23, 256  ;;  %p98_p9 = scmp.lt.s32.totalorder %s50_s23, %s50_s23 }
  0x16   :  { %26 = vadd.xlane.f32.xlu0 %v25_v2  ;;  %p94_p8 = scmp.ne.s32.totalorder %s50_s23, %s93_s24  ;;  %p99_p10 = scmp.lt.s32.totalorder %s93_s24, %s93_s24 }
  0x18   :  { %p100_p11 = por %p99_p10, %p98_p9 }
  0x1a   :  { %p101_p12 = pnand %p100_p11, %p94_p8 }
  0xa3   :  { %v27_v3 = vpop.xlane.xlu0 %26 }
  0xa4   :  { %v28_v4 = vrot.slane %v27_v3, 4 }
  0xa6   :  { %v29_v5 = vadd.f32 %v28_v4, %v27_v3 }
  0xa8   :  { %v30_v6 = vrot.slane %v29_v5, 2 }
  0xaa   :  { %v31_v7 = vadd.f32 %v30_v6, %v29_v5 }
  0xac   :  { %v32_v8 = vrot.slane %v31_v7, 1 }
  0xae   :  { %v33_v9 = vadd.f32 %v32_v8, %v31_v7 }
  0xb0   :  { %61 = vpush %v33_v9 }
  0xe1   :  { %s62_s20 = spop %61 }
  0xe2   :  { %v35_v10 = vstv %s62_s20 }
  0xe3   :  { %69 = vrcp.f32 %v35_v10 }
  0xed   :  { %v70_v11 = vpop.eup %69 }
  0xee   :  { %63 = vpush %v70_v11 }
 0x11f   :  { %s64_s0 = spop %63 }
 0x120   :  { %s38_s21 = smul.f32 2048.0, %s64_s0 }
 0x122   :  { %v39_v12 = vstv %s38_s21 }
 0x123   :  { %v40_v13 = vmul.f32 %v39_v12, %v23_v0  ;;  %v41_v14 = vmul.f32 %v39_v12, %v24_v1 }
 0x125   :  { %42 = vst [vmem:[#allocation5] sm:$0xff] %v40_v13  ;;  %43 = vst [vmem:[#allocation5 + $0x8] sm:$0xff] %v41_v14 }
 0x126   :  { %104 = shalt.err (!%p101_p12)
}
 0x127   :  { %s105_s27 = scalar_lea.hbm %s164_s1, 256 }
 0x128   :  { %p106_p13 = scmp.ne.s32.totalorder %s164_s1, %s105_s27  ;;  %p109_p0 = scmp.lt.u32.totalorder %s105_s27, %s164_s1 }
 0x12a   :  { %p111_p1 = pnand %p109_p0, %p106_p13 }
 0x12c   :  { %114 = shalt.err (!%p111_p1)
}
 0x12d   :  { %55 = dma.vmem_to_hbm [thread:$0]  %s50_s23, 256, %s164_s1, [#allocation4], %s120_s16, %s120_s16, %s121_s17  }
 0x12e   :  { %117 = dma.done.wait [#allocation4], 256  }
 0x12f   :  { %118 = vsyncadd [#allocation4], 4294967040 }
 0x130   :  { %59 = vsyncpa [#allocation3], 1 }
 0x131   :  { %60 = vsyncpa [#allocation4], 1 }

</bundles_post_ra>
